<compile_context>
chip_gen: v7x
topology: tpu7x:2x2x1
jax: 0.10.0
libtpu: 0.0.40
codegen_flags: <defaults>
</compile_context>

<pallas_src>
import jax
import jax.numpy as jnp
from jax.experimental import pallas as pl
from jax.experimental.pallas import tpu as pltpu


def conv_ce_kernel(w_ref, b_ref, xcol_ref, lab_ref, logits_ref, pixloss_ref):
    """One grid step = one lane-tile of TM pixels of one image.

    w_ref      : (Cout, 9*Cin)   im2col conv weights (K order: cin, dy, dx)
    b_ref      : (Cout, 1)       conv bias (broadcast over lanes)
    xcol_ref   : (9*Cin, TM)     im2col activations for this pixel tile
    lab_ref    : (1, TM) int32   class labels for this pixel tile
    logits_ref : (Cout, TM)      conv outputs (lane-dense)
    pixloss_ref: (1, TM)         per-pixel cross-entropy loss
    """
    # 3x3 conv == one im2col matmul on the MXU, f32 accumulation.
    logits = jnp.dot(w_ref[...], xcol_ref[...],
                     preferred_element_type=jnp.float32)
    logits = logits + b_ref[...]                       # lane broadcast of bias
    logits_ref[...] = logits.astype(logits_ref.dtype)

    # Cross-entropy per pixel; class axis lives on sublanes (size Cout).
    m = jnp.max(logits, axis=0, keepdims=True)                       # (1, TM)
    lse = m + jnp.log(jnp.sum(jnp.exp(logits - m), axis=0, keepdims=True))
    cls = jax.lax.broadcasted_iota(jnp.int32, logits.shape, 0)       # (Cout, TM)
    onehot = (lab_ref[...] == cls).astype(jnp.float32)               # (Cout, TM)
    true_logit = jnp.sum(logits * onehot, axis=0, keepdims=True)     # (1, TM)
    pixloss_ref[...] = lse - true_logit


def _pick_lane_tile(hw):
    """Largest 'nice' lane tile (multiple of 128) dividing hw."""
    for t in (2048, 1024, 512, 256, 128):
        if hw % t == 0:
            return t
    return hw


@jax.jit
def full_model_forward(x, labels, weight, bias):
    """FullModel.forward(inputs, labels) -> (outputs, loss[None]).

    x      : (N, Cin, H, W)  float32 (PyTorch NCHW)
    labels : (N, H, W)       int32 class indices
    weight : (Cout, Cin, 3, 3)
    bias   : (Cout,)
    """
    N, Cin, H, W = x.shape
    Cout = weight.shape[0]
    HW = H * W
    K = Cin * 9
    assert HW % 128 == 0, "H*W must be a multiple of 128 for lane tiling"
    TM = _pick_lane_tile(HW)

    # ---- glue: im2col straight from NCHW (no transposes) -------------------
    xp = jnp.pad(x.astype(jnp.float32),
                 ((0, 0), (0, 0), (1, 1), (1, 1)))        # (N, Cin, H+2, W+2)
    taps = jnp.stack(
        [xp[:, :, dy:dy + H, dx:dx + W] for dy in range(3) for dx in range(3)],
        axis=2)                                           # (N, Cin, 9, H, W)
    x_col = taps.reshape(N, K, HW)                        # K order: (cin, dy, dx)
    w2 = weight.reshape(Cout, K).astype(jnp.float32)      # matches K order, no transpose
    b2 = bias.reshape(Cout, 1).astype(jnp.float32)
    lab = labels.reshape(N, 1, HW).astype(jnp.int32)

    logits, pixloss = pl.pallas_call(
        conv_ce_kernel,
        out_shape=(
            jax.ShapeDtypeStruct((N, Cout, HW), jnp.float32),
            jax.ShapeDtypeStruct((N, 1, HW), jnp.float32),
        ),
        grid_spec=pltpu.PrefetchScalarGridSpec(
            num_scalar_prefetch=0,
            grid=(N, HW // TM),
            in_specs=[
                pl.BlockSpec((Cout, K), lambda n, j: (0, 0)),
                pl.BlockSpec((Cout, 1), lambda n, j: (0, 0)),
                pl.BlockSpec((None, K, TM), lambda n, j: (n, 0, j)),
                pl.BlockSpec((None, 1, TM), lambda n, j: (n, 0, j)),
            ],
            out_specs=[
                pl.BlockSpec((None, Cout, TM), lambda n, j: (n, 0, j)),
                pl.BlockSpec((None, 1, TM), lambda n, j: (n, 0, j)),
            ],
        ),
        compiler_params=pltpu.CompilerParams(
            dimension_semantics=("parallel", "parallel")),  # no cross-tile deps
    )(w2, b2, x_col, lab)

    # (N, Cout, HW) -> (N, Cout, H, W): free reshape, no transpose.
    outputs = logits.reshape(N, Cout, H, W)
    loss = jnp.sum(pixloss) / (N * HW)           # CrossEntropyLoss mean reduction
    return outputs, loss[None]                   # torch.unsqueeze(loss, 0)


def reference_forward(x, labels, weight, bias):
    """Pure-JAX reference for correctness checking."""
    out = jax.lax.conv_general_dilated(
        x.astype(jnp.float32), weight.astype(jnp.float32),
        window_strides=(1, 1), padding="SAME",
        dimension_numbers=("NCHW", "OIHW", "NCHW"))
    out = out + bias[None, :, None, None]
    logits = jnp.transpose(out, (0, 2, 3, 1))                    # (N, H, W, Cout)
    lse = jax.scipy.special.logsumexp(logits, axis=-1)
    true = jnp.take_along_axis(logits, labels[..., None], axis=-1)[..., 0]
    loss = jnp.mean(lse - true)
    return out, loss[None]


if __name__ == "__main__":
    N, Cin, H, W = 2, 4, 16, 16
    NUM_CLASSES = 8

    key = jax.random.PRNGKey(0)
    kx, kl, kw, kb = jax.random.split(key, 4)

    x = jax.random.normal(kx, (N, Cin, H, W), dtype=jnp.float32)
    labels = jax.random.randint(kl, (N, H, W), 0, NUM_CLASSES, dtype=jnp.int32)
    # Deterministic "model" parameters (Conv2d(Cin, NUM_CLASSES, 3, padding=1)).
    weight = 0.1 * jax.random.normal(kw, (NUM_CLASSES, Cin, 3, 3), dtype=jnp.float32)
    bias = 0.1 * jax.random.normal(kb, (NUM_CLASSES,), dtype=jnp.float32)

    # TODO(synk): training-time mixup branch (mixup_criterion) and arbitrary
    # multi-loss dicts are not implemented; this covers the default single
    # segmentation CrossEntropy / eval path.
    outputs, loss = full_model_forward(x, labels, weight, bias)
    jax.block_until_ready((outputs, loss))

    ref_out, ref_loss = reference_forward(x, labels, weight, bias)
    assert outputs.shape == (N, NUM_CLASSES, H, W)
    assert loss.shape == (1,)
    assert jnp.allclose(outputs, ref_out, rtol=1e-3, atol=1e-3)
    assert jnp.allclose(loss, ref_loss, rtol=1e-3, atol=1e-3)

    print("KERNEL_OK")
</pallas_src>

<mosaic_0001>
module attributes {stable_mosaic.version = 11 : i64} {
  func.func @conv_ce_kernel(%arg0: i32, %arg1: i32, %arg2: memref<8x36xf32, #tpu.memory_space<vmem>>, %arg3: memref<8x1xf32, #tpu.memory_space<vmem>>, %arg4: memref<1x36x256xf32, #tpu.memory_space<vmem>>, %arg5: memref<1x1x256xi32, #tpu.memory_space<vmem>>, %arg6: memref<1x8x256xf32, #tpu.memory_space<vmem>>, %arg7: memref<1x1x256xf32, #tpu.memory_space<vmem>>) attributes {dimension_semantics = [#tpu.dimension_semantics<parallel>, #tpu.dimension_semantics<parallel>], iteration_bounds = array<i64: 2, 1>, scalar_prefetch = 0 : i64, scratch_operands = 0 : i64, tpu.core_type = #tpu.core_type<tc>, window_params = [{pipeline_mode = #tpu.pipeline_mode<synchronous>, transform_indices = @transform_0, window_bounds = array<i64: 8, 36>}, {pipeline_mode = #tpu.pipeline_mode<synchronous>, transform_indices = @transform_1, window_bounds = array<i64: 8, 1>}, {transform_indices = @transform_2, window_bounds = array<i64: 1, 36, 256>}, {transform_indices = @transform_3, window_bounds = array<i64: 1, 1, 256>}, {transform_indices = @transform_4, window_bounds = array<i64: 1, 8, 256>}, {transform_indices = @transform_5, window_bounds = array<i64: 1, 1, 256>}]} {
    %c0 = arith.constant 0 : index
    %c0_0 = arith.constant 0 : index
    %0 = vector.load %arg2[%c0, %c0_0] : memref<8x36xf32, #tpu.memory_space<vmem>>, vector<8x36xf32>
    %c0_1 = arith.constant 0 : index
    %c0_2 = arith.constant 0 : index
    %c0_3 = arith.constant 0 : index
    %1 = vector.load %arg4[%c0_1, %c0_2, %c0_3] : memref<1x36x256xf32, #tpu.memory_space<vmem>>, vector<1x36x256xf32>
    %2 = vector.shape_cast %1 : vector<1x36x256xf32> to vector<36x256xf32>
    %cst = arith.constant dense<0.000000e+00> : vector<8x256xf32>
    %3 = tpu.matmul %0, %2, %cst {dimension_numbers = #tpu.dot_dimension_numbers<[1], [0], [0], [1], [0, 0, 1, 1], [], []>} : vector<8x36xf32>, vector<36x256xf32>, vector<8x256xf32> -> vector<8x256xf32>
    %c0_4 = arith.constant 0 : index
    %c0_5 = arith.constant 0 : index
    %4 = vector.load %arg3[%c0_4, %c0_5] : memref<8x1xf32, #tpu.memory_space<vmem>>, vector<8x1xf32>
    %5 = vector.broadcast %4 : vector<8x1xf32> to vector<8x256xf32>
    %6 = arith.addf %3, %5 : vector<8x256xf32>
    %c0_6 = arith.constant 0 : index
    %c0_7 = arith.constant 0 : index
    %c0_8 = arith.constant 0 : index
    %7 = vector.load %arg6[%c0_6, %c0_7, %c0_8] : memref<1x8x256xf32, #tpu.memory_space<vmem>>, vector<1x8x256xf32>
    %8 = vector.shape_cast %7 : vector<1x8x256xf32> to vector<8x256xf32>
    %9 = vector.shape_cast %6 : vector<8x256xf32> to vector<1x8x256xf32>
    tpu.vector_store %arg6[%c0_6, %c0_7, %c0_8], %9 {strides = array<i32>} : memref<1x8x256xf32, #tpu.memory_space<vmem>>, vector<1x8x256xf32>,
    %cst_9 = arith.constant dense<0xFF800000> : vector<256xf32>
    %10 = vector.multi_reduction <maximumf>, %6, %cst_9 [0] : vector<8x256xf32> to vector<256xf32>
    %11 = vector.shape_cast %10 : vector<256xf32> to vector<1x256xf32>
    %12 = vector.broadcast %11 : vector<1x256xf32> to vector<8x256xf32>
    %13 = arith.subf %6, %12 : vector<8x256xf32>
    %14 = math.exp %13 : vector<8x256xf32>
    %cst_10 = arith.constant dense<0.000000e+00> : vector<256xf32>
    %15 = vector.multi_reduction <add>, %14, %cst_10 [0] : vector<8x256xf32> to vector<256xf32>
    %16 = vector.shape_cast %15 : vector<256xf32> to vector<1x256xf32>
    %17 = math.log %16 : vector<1x256xf32>
    %18 = arith.addf %11, %17 : vector<1x256xf32>
    %19 = tpu.iota {dimensions = array<i32: 0>} : vector<8x256xi32>
    %c0_11 = arith.constant 0 : index
    %c0_12 = arith.constant 0 : index
    %c0_13 = arith.constant 0 : index
    %20 = vector.load %arg5[%c0_11, %c0_12, %c0_13] : memref<1x1x256xi32, #tpu.memory_space<vmem>>, vector<1x1x256xi32>
    %21 = vector.shape_cast %20 : vector<1x1x256xi32> to vector<1x256xi32>
    %22 = vector.broadcast %21 : vector<1x256xi32> to vector<8x256xi32>
    %23 = arith.cmpi eq, %22, %19 : vector<8x256xi32>
    %24 = arith.extui %23 : vector<8x256xi1> to vector<8x256xi32>
    %25 = arith.sitofp %24 : vector<8x256xi32> to vector<8x256xf32>
    %26 = arith.mulf %6, %25 : vector<8x256xf32>
    %cst_14 = arith.constant dense<0.000000e+00> : vector<256xf32>
    %27 = vector.multi_reduction <add>, %26, %cst_14 [0] : vector<8x256xf32> to vector<256xf32>
    %28 = vector.shape_cast %27 : vector<256xf32> to vector<1x256xf32>
    %29 = arith.subf %18, %28 : vector<1x256xf32>
    %c0_15 = arith.constant 0 : index
    %c0_16 = arith.constant 0 : index
    %c0_17 = arith.constant 0 : index
    %30 = vector.load %arg7[%c0_15, %c0_16, %c0_17] : memref<1x1x256xf32, #tpu.memory_space<vmem>>, vector<1x1x256xf32>
    %31 = vector.shape_cast %30 : vector<1x1x256xf32> to vector<1x256xf32>
    %32 = vector.shape_cast %29 : vector<1x256xf32> to vector<1x1x256xf32>
    tpu.vector_store %arg7[%c0_15, %c0_16, %c0_17], %32 {strides = array<i32>} : memref<1x1x256xf32, #tpu.memory_space<vmem>>, vector<1x1x256xf32>,
    return
  }
  func.func @transform_0(%arg0: i32, %arg1: i32) -> (i32, i32) {
    %c0_i32 = arith.constant 0 : i32
    %c0_i32_0 = arith.constant 0 : i32
    %c0_i32_1 = arith.constant 0 : i32
    return %c0_i32, %c0_i32_0 : i32, i32
  }
  func.func @transform_1(%arg0: i32, %arg1: i32) -> (i32, i32) {
    %c0_i32 = arith.constant 0 : i32
    %c0_i32_0 = arith.constant 0 : i32
    %c0_i32_1 = arith.constant 0 : i32
    return %c0_i32, %c0_i32_0 : i32, i32
  }
  func.func @transform_2(%arg0: i32, %arg1: i32) -> (i32, i32, i32) {
    %c0_i32 = arith.constant 0 : i32
    %c0_i32_0 = arith.constant 0 : i32
    return %arg0, %c0_i32, %arg1 : i32, i32, i32
  }
  func.func @transform_3(%arg0: i32, %arg1: i32) -> (i32, i32, i32) {
    %c0_i32 = arith.constant 0 : i32
    %c0_i32_0 = arith.constant 0 : i32
    return %arg0, %c0_i32, %arg1 : i32, i32, i32
  }
  func.func @transform_4(%arg0: i32, %arg1: i32) -> (i32, i32, i32) {
    %c0_i32 = arith.constant 0 : i32
    %c0_i32_0 = arith.constant 0 : i32
    return %arg0, %c0_i32, %arg1 : i32, i32, i32
  }
  func.func @transform_5(%arg0: i32, %arg1: i32) -> (i32, i32, i32) {
    %c0_i32 = arith.constant 0 : i32
    %c0_i32_0 = arith.constant 0 : i32
    return %arg0, %c0_i32, %arg1 : i32, i32, i32
  }
}

</mosaic_0001>

<bundles_post_ra>
// kernel: full_model_forward.1
= control target key start
LH: loop header
LB: loop body
LE: loop exit
PB: predicated region body
PF: predicated region fallthrough
CT: control target
= control target key end

     0   :  { %s778_s18 = smov 0   ;;  %s780_s19 = smov 0   ;;  %s841_s0 = inlined_call_operand.vmem [shape: f32[8,36], index: 0, kind: input, shape index: {}]   ;;  %s842_s1 = inlined_call_operand.vmem [shape: f32[8,1], index: 1, kind: input, shape index: {}]   ;;  %s843_s2 = inlined_call_operand.vmem [shape: f32[2,36,256], index: 2, kind: input, shape index: {}]   ;;  %s844_s3 = inlined_call_operand.vmem [shape: s32[2,1,256], index: 3, kind: input, shape index: {}]   ;;  %s845_s4 = inlined_call_operand.vmem [shape: f32[2,8,256], index: 4, kind: output, shape index: {0}]   ;;  %s846_s5 = inlined_call_operand.vmem [shape: f32[2,1,256], index: 5, kind: output, shape index: {1}]  }
   0x1   :  { %s782_s20 = smov 0  }
   0x2 LB: > { %s28_s21 = sadd.s32 1, %s739_s19  ;;  %p662_p0 = scmp.ge.s32.totalorder %s743_s20, 1  ;;  %s743_s20 = sphi %s782_s20, %s16_s20   ;;  %s739_s19 = sphi %s780_s19, %s848_s19   ;;  %s735_s18 = sphi %s778_s18, %s847_s18  }
   0x3   : > { %p30_p1 = scmp.ge.s32.totalorder %s28_s21, 2  ;;  %p229_p2 = scmp.lt.s32.totalorder %s743_s20, 3 }
   0x5   : > { %s850_s21 = smov (%p30_p1, %s28_s21), 0  ;;  %p230_p3 = pnand %p662_p0, %p229_p2 }
   0x6   : > { %p282_p4 = scmp.lt.s32.totalorder (!%p230_p3), %s735_s18, 1  ;;  %v456_v0 = vlaneseq (!%p230_p3)  ;;  %v330_v1 = vld [vmem:[%s842_s1] sm:$0xff] (!%p230_p3)  ;;  %v745_v2 = vmov (!%p230_p3), 0.0   ;;  %v746_v4 = vmov (!%p230_p3), 0   ;;  %vm340_vm2 = vcmask (!%p230_p3), 1043456  }
   0x7   : > { %233 = sbr.rel (%p230_p3) target bundleno = 309 (0x135), region = 36  ;;  %411 = vmatprep.mubr.f32.mxu0 (!%p230_p3), %v745_v2  ;;  %712 = vset.pattern.permute.xlu0 (!%p230_p3), %v746_v4  ;;  %v319_v26 = vld [vmem:[%s841_s0] sm:$0xff] (!%p230_p3)  ;;  %vm336_vm3 = vcmask (!%p230_p3), 293888  }
   0x8   : > { %v802_v3 = vshrl.u32 (!%p230_p3), %v456_v0, 7  ;;  %333 = vperm.xlu0 (!%p230_p3), %712, %v330_v1   ;;  %vm509_vm4 = vcmp.lt.s32.totalorder (!%p230_p3), %v456_v0, 256 }
   0xa   : > { %v461_v5 = vsub.s32 (!%p230_p3), 0, %v802_v3  ;;  %v465_v6 = vsub.s32 (!%p230_p3), 1, %v802_v3 }
   0xe   : > { %s852_s18 = smov (!%p282_p4, %s735_s18), 1 }
   0xf   : > { %s684_s24 = smul.u32 80, %s852_s18  ;;  %s664_s25 = sshll.u32 %s852_s18, 1 }
  0x10   : > { %s298_s28 = scalar_lea.vmem %s844_s3, %s664_s25  ;;  %s675_s9 = sshll.u32 %s852_s18, 4 }
  0x11   : > { %s289_s6 = scalar_lea.vmem %s843_s2, %s684_s24  ;;  %v458_v7 = vld [vmem:[%s298_s28] sm:$0x3]  ;;  %s308_s12 = scalar_lea.vmem %s845_s4, %s675_s9 }
  0x12   : > { %v321_v8 = vld [vmem:[%s289_s6 + $0x8] sm:$0xff]  ;;  %v323_v9 = vld [vmem:[%s289_s6 + $0x18] sm:$0xff]  ;;  %v320_v10 = vld [vmem:[%s289_s6] sm:$0xff]  ;;  %v462_v11 = vrot.slane %v458_v7, %v461_v5  ;;  %v466_v12 = vrot.slane %v458_v7, %v465_v6  ;;  %s317_s15 = scalar_lea.vmem %s846_s5, %s664_s25 }
  0x13   : > { %v676_v13 = vpack.c.bf16 %v323_v9, %v321_v8  ;;  %v322_v14 = vld [vmem:[%s289_s6 + $0x10] sm:$0xff]  ;;  %v325_v15 = vld [vmem:[%s289_s6 + $0x28] sm:$0xff]  ;;  %v327_v16 = vld [vmem:[%s289_s6 + $0x38] sm:$0xff] }
  0x14   : > { %v678_v17 = vpack.c.bf16 %v322_v14, %v320_v10  ;;  %v680_v18 = vpack.c.bf16 %v327_v16, %v325_v15  ;;  %v324_v19 = vld [vmem:[%s289_s6 + $0x20] sm:$0xff]  ;;  %v326_v20 = vld [vmem:[%s289_s6 + $0x30] sm:$0xff]  ;;  %vm467_vm0 = vcmp.eq.s32.totalorder %v462_v11, %v802_v3  ;;  %vm468_vm1 = vcmp.eq.s32.totalorder %v466_v12, %v802_v3  ;;  %v329_v24 = vld [vmem:[%s289_s6 + $0x48] sm:$0xf] }
  0x15   : > { %677 = vmatprep.subr.bf16.mxu0 %v676_v13  ;;  %v671_v21 = vsel %vm467_vm0, 1.0, %v745_v2  ;;  %v672_v22 = vsel %vm468_vm1, 1.0, %v745_v2  ;;  %v682_v23 = vpack.c.bf16 %v326_v20, %v324_v19  ;;  %v328_v25 = vld [vmem:[%s289_s6 + $0x40] sm:$0xf]  ;;  %v747_v10 = vmov 1966171168  }
  0x16   : > { %679 = vmatpush1.bf16.msra.mxu0 %v678_v17  ;;  %v493_v11 = vunpack.c.l.s4 %v747_v10 }
  0x17   : > { %681 = vmatprep.subr.bf16.mxu0 %v680_v18 }
  0x18   : > { %v494_v18 = vunpack.c.0.s8 %v493_v11 }
  0x1a   : > { %683 = vmatpush1.bf16.msra.mxu0 %v682_v23 }
  0x1b   : > { %668 = vmatprep.subr.msk.mxu0 %vm340_vm2, %v329_v24 }
  0x1e   : > { %669 = vmatpush1.msk.msra.mxu0 %vm340_vm2, %v328_v25  ;;  %v497_v25 = vsub.s32 %v494_v18, %v802_v3 }
  0x1f   : > { %670 = vmatmul.mubr.msk.f32.vlgmr.msra.gmra.mrb[0].mxu0 %vm336_vm3, %v319_v26 }
  0x87   : > { %v334_v27 = vpop.permute.xlu0 %333 }
  0xf2   : > { %v413_v28 = vpop.f32.mrb[0].mxu0 }
  0xf3   : > { %v414_v29 = vadd.f32 %v413_v28, %v334_v27  ;;  %v415_v30 = vpop.f32.mrb[1].mxu0 }
  0xf4   : > { %v416_v31 = vadd.f32 %v415_v30, %v334_v27 }
  0xf5   : > { %418 = vst [vmem:[%s308_s12] sm:$0xff] %v414_v29  ;;  %v420_v32 = vrot.slane %v414_v29, 4  ;;  %v473_v33 = vmul.f32 %v671_v21, %v414_v29 }
  0xf6   : > { %419 = vst [vmem:[%s308_s12 + $0x8] sm:$0xff] %v416_v31  ;;  %v426_v34 = vrot.slane %v416_v31, 4  ;;  %v474_v35 = vmul.f32 %v672_v22, %v416_v31 }
  0xf7   : > { %v421_v36 = vmax.f32 %v414_v29, %v420_v32  ;;  %v475_v57 = vrot.slane %v473_v33, 4 }
  0xf8   : > { %v427_v37 = vmax.f32 %v416_v31, %v426_v34  ;;  %v481_v60 = vrot.slane %v474_v35, 4 }
  0xf9   : > { %v422_v38 = vrot.slane %v421_v36, 2  ;;  %v476_v63 = vadd.f32 %v475_v57, %v473_v33 }
  0xfa   : > { %v428_v39 = vrot.slane %v427_v37, 2  ;;  %v482_v4 = vadd.f32 %v481_v60, %v474_v35 }
  0xfb   : > { %v423_v40 = vmax.f32 %v421_v36, %v422_v38  ;;  %v477_v6 = vrot.slane %v476_v63, 2 }
  0xfc   : > { %v429_v41 = vmax.f32 %v427_v37, %v428_v39  ;;  %v483_v7 = vrot.slane %v482_v4, 2 }
  0xfd   : > { %v424_v42 = vrot.slane %v423_v40, 1  ;;  %v478_v8 = vadd.f32 %v477_v6, %v476_v63 }
  0xfe   : > { %v430_v43 = vrot.slane %v429_v41, 1  ;;  %v484_v9 = vadd.f32 %v483_v7, %v482_v4 }
  0xff   : > { %v425_v44 = vmax.f32 %v423_v40, %v424_v42  ;;  %v479_v12 = vrot.slane %v478_v8, 1 }
 0x100   : > { %v431_v45 = vmax.f32 %v429_v41, %v430_v43  ;;  %v485_v14 = vrot.slane %v484_v9, 1 }
 0x101   : > { %v432_v46 = vsub.f32 %v414_v29, %v425_v44  ;;  %v480_v20 = vadd.f32 %v479_v12, %v478_v8 }
 0x102   : > { %v433_v47 = vsub.f32 %v416_v31, %v431_v45  ;;  %v486_v22 = vadd.f32 %v485_v14, %v484_v9 }
 0x103   : > { %v434_v48 = vmul.f32 1.442695, %v432_v46 }
 0x104   : > { %v436_v49 = vmul.f32 1.442695, %v433_v47 }
 0x105   : > { %713 = vpow2.f32 %v434_v48 }
 0x106   : > { %715 = vpow2.f32 %v436_v49 }
 0x10f   : > { %v714_v50 = vpop.eup %713 }
 0x110   : > { %v716_v51 = vpop.eup %715  ;;  %v438_v52 = vrot.slane %v714_v50, 4 }
 0x111   : > { %v444_v53 = vrot.slane %v716_v51, 4 }
 0x112   : > { %v439_v54 = vadd.f32 %v714_v50, %v438_v52 }
 0x113   : > { %v445_v55 = vadd.f32 %v716_v51, %v444_v53 }
 0x114   : > { %v440_v56 = vrot.slane %v439_v54, 2 }
 0x115   : > { %v446_v58 = vrot.slane %v445_v55, 2 }
 0x116   : > { %v441_v59 = vadd.f32 %v440_v56, %v439_v54 }
 0x117   : > { %v447_v61 = vadd.f32 %v446_v58, %v445_v55 }
 0x118   : > { %v442_v62 = vrot.slane %v441_v59, 1 }
 0x119   : > { %v448_v1 = vrot.slane %v447_v61, 1 }
 0x11a   : > { %v443_v2 = vadd.f32 %v442_v62, %v441_v59 }
 0x11b   : > { %v449_v5 = vadd.f32 %v448_v1, %v447_v61 }
 0x11c   : > { %717 = vlog2.f32 %v443_v2 }
 0x11d   : > { %719 = vlog2.f32 %v449_v5 }
 0x126   : > { %v718_v13 = vpop.eup %717 }
 0x127   : > { %v720_v15 = vpop.eup %719  ;;  %v451_v16 = vmul.f32 0.6931472, %v718_v13 }
 0x128   : > { %v453_v17 = vmul.f32 0.6931472, %v720_v15 }
 0x129   : > { %v454_v19 = vadd.f32 %v451_v16, %v425_v44 }
 0x12a   : > { %v455_v21 = vadd.f32 %v453_v17, %v431_v45 }
 0x12b   : > { %v487_v23 = vsub.f32 %v454_v19, %v480_v20 }
 0x12c   : > { %v488_v24 = vsub.f32 %v455_v21, %v486_v22 }
 0x12e   : > { %v491_v26 = vcombine.low %v487_v23, %v488_v24 }
 0x130   : > { %v498_v27 = vrot.slane %v491_v26, %v497_v25 }
 0x132   : > { %v505_v28 = vrot.slane %v498_v27, %v497_v25 }
 0x134   : > { %511 = vst.msk [vmem:[%s317_s15] sm:$0x3] %vm509_vm4, %v505_v28 }
 0x135 PF: > { %s16_s20 = sadd.s32 1, %s743_s20   ;;  %s847_s18 = smov %s739_s19 }
 0x136   : > { %p13_p5 = scmp.ge.s32.totalorder %s16_s20, 4   ;;  %s848_s19 = smov %s850_s21 }
 0x138   :  { %15 = sbr.rel (!%p13_p5) target bundleno = 2 (0x2), region = 81 }

</bundles_post_ra>
